<compile_context>
chip_gen: v7x
topology: tpu7x:2x2x1
jax: 0.10.0
libtpu: 0.0.40
codegen_flags: <defaults>
</compile_context>

<pallas_src>
import jax
import jax.numpy as jnp
from jax.experimental import pallas as pl
from jax.experimental.pallas import tpu as pltpu  # noqa: F401  (TPU backend)

# ----------------------------- model config -----------------------------
B = 2          # batch
L = 16         # seq_len
C = 5          # channels / vocab: A C G T N
D = 32         # d_model
NC = 2         # num_classes
KW = 3         # depthwise causal conv width
BL = B * L     # flattened batch*seq rows

# ----------------------------- packed-slab layout ------------------------
# One f32 [SLAB_ROWS, 128] slab; every block starts on an 8-row boundary.
LANES = 128
CP = 8                                   # padded vocab rows for fused weight
R_WALL = 0                               # [CP, 4D]     Wq' | Wk' | Wv' | emb
R_SHIFT = R_WALL + CP                    # [(KW-1)*BL, BL] stacked shift mats
R_WOUT = R_SHIFT + (KW - 1) * BL         # [D, D]       output projection
R_WHEAD = R_WOUT + D                     # [D, LANES]   head (lanes 0:NC)
R_KERN = R_WHEAD + D                     # [8, D]       conv taps (rows 0:KW)
R_POOL = R_KERN + 8                      # [8, BL]      mean-pool (rows 0:B)
R_BHEAD = R_POOL + 8                     # [8, LANES]   head bias (lanes 0:NC)
SLAB_ROWS = R_BHEAD + 8                  # 160 rows -> 80 KiB
OUT_ROWS = 8                             # (8,128)-padded logits block


def hyena_dna_kernel(x_ref, slab_ref, out_ref):
    # x_ref: [BL, C] (batch*seq flattened outside); slab_ref: [SLAB_ROWS, 128]
    xb = x_ref[...]

    # ---- constants: static slices of the single packed weight slab -------
    w_all = slab_ref[R_WALL:R_WALL + CP, :]                       # [8, 128]
    s_stack = slab_ref[R_SHIFT:R_SHIFT + (KW - 1) * BL, 0:BL]     # [64, 32]
    w_out = slab_ref[R_WOUT:R_WOUT + D, 0:D]                      # [32, 32]
    w_head = slab_ref[R_WHEAD:R_WHEAD + D, :]                     # [32, 128]
    kern = slab_ref[R_KERN:R_KERN + CP, 0:D]                      # [8, 32]
    pool = slab_ref[R_POOL:R_POOL + CP, 0:BL]                     # [8, 32]
    bhead = slab_ref[R_BHEAD:R_BHEAD + CP, :]                     # [8, 128]

    # ---- argmax over channels -> first-max one-hot (jnp.argmax semantics)
    col = jax.lax.broadcasted_iota(jnp.int32, (BL, C), 1)
    max_val = jnp.max(xb, axis=-1, keepdims=True)                 # [BL, 1]
    idx = jnp.min(jnp.where(xb == max_val, col, C),
                  axis=-1, keepdims=True)                         # [BL, 1]
    col_p = jax.lax.broadcasted_iota(jnp.int32, (BL, CP), 1)
    onehot = (col_p == idx).astype(jnp.float32)                   # [BL, 8]

    # ---- fused embedding + q/k/v: ONE lane-dense MXU push ----------------
    qkve = jnp.dot(onehot, w_all,
                   preferred_element_type=jnp.float32)            # [BL, 128]
    q = qkve[:, 0:D]
    k = qkve[:, D:2 * D]
    v = qkve[:, 2 * D:3 * D]
    emb = qkve[:, 3 * D:4 * D]

    # ---- depthwise causal short conv: both taps shifted in one push ------
    # Precomputed Toeplitz matrices already mask the batch boundary.
    shifted = jnp.dot(s_stack, v,
                      preferred_element_type=jnp.float32)         # [64, D]
    vc = v * kern[0:1, :]
    for t in range(1, KW):
        vc = vc + shifted[(t - 1) * BL:t * BL, :] * kern[t:t + 1, :]

    # ---- gating + output projection + residual ----------------------------
    y = jnp.dot(q * (k * vc), w_out,
                preferred_element_type=jnp.float32) + emb         # [BL, D]

    # ---- mean pool (1/L folded into the pool matrix) + head ---------------
    pooled = jnp.dot(pool, y, preferred_element_type=jnp.float32)  # [8, D]
    logits = jnp.dot(pooled, w_head,
                     preferred_element_type=jnp.float32)          # [8, 128]

    # Single unmasked, lane/sublane-dense store; wrapper slices to (B, NC).
    out_ref[...] = logits + bhead


def hyena_dna_logits(x, slab):
    x2 = x.reshape(BL, C)  # free XLA-level reshape; kernel sees [BL, C]
    # Single invocation: no grid, both operands are one full VMEM block.
    # TODO(synk): if batch grows (Captum-style many-perturbation runs), add a
    # "parallel" batch grid sized against v7x's 64 MiB VMEM so both
    # TensorCores get work.
    padded = pl.pallas_call(
        hyena_dna_kernel,
        out_shape=jax.ShapeDtypeStruct((OUT_ROWS, LANES), jnp.float32),
    )(x2, slab)
    return padded[:B, :NC]


@jax.jit
def hyena_dna_forward_wrapper(x, slab):
    """Mirrors HyenaDNAForwardWrapper.forward semantics (one jitted dispatch)."""
    if x.ndim != 3:
        raise ValueError(f"Expected 3-D input, got ndim={x.ndim}")
    logits = hyena_dna_logits(x, slab)
    # Faithful reproduction of the wrapper's (always-true) softmax-sum check.
    probs = jax.nn.softmax(logits, axis=-1)
    already_normalized = jnp.allclose(
        jnp.sum(probs, axis=-1), jnp.ones(logits.shape[0]),
        rtol=1e-5, atol=1e-8)
    return jnp.where(already_normalized, logits, probs)


# ----------------------------- weight packing ----------------------------
def pack_slab(params):
    """Packs all weights into one lane-dense [SLAB_ROWS, 128] f32 slab."""
    emb, w_q, w_k, w_v, kern, w_out, w_head, b_head = params
    slab = jnp.zeros((SLAB_ROWS, LANES), jnp.float32)

    # Fused one-hot -> (q, k, v, emb) weight: [C, 4D] == [5, 128].
    w_all = jnp.concatenate([emb @ w_q, emb @ w_k, emb @ w_v, emb], axis=1)
    slab = slab.at[R_WALL:R_WALL + C, 0:4 * D].set(w_all)

    # Stacked causal shift matrices (batch-boundary masked), [ (KW-1)*BL, BL ].
    row = jnp.arange(BL)[:, None]
    colm = jnp.arange(BL)[None, :]
    s_mats = [((colm == row - t) & ((row % L) >= t)).astype(jnp.float32)
              for t in range(1, KW)]
    slab = slab.at[R_SHIFT:R_SHIFT + (KW - 1) * BL, 0:BL].set(
        jnp.concatenate(s_mats, axis=0))

    slab = slab.at[R_WOUT:R_WOUT + D, 0:D].set(w_out)
    slab = slab.at[R_WHEAD:R_WHEAD + D, 0:NC].set(w_head)
    slab = slab.at[R_KERN:R_KERN + KW, 0:D].set(kern)

    # Mean-pool segment matrix with 1/L folded in, [B, BL].
    brow = jnp.arange(B)[:, None]
    bcol = jnp.arange(BL)[None, :]
    pool = jnp.where(bcol // L == brow, 1.0 / L, 0.0).astype(jnp.float32)
    slab = slab.at[R_POOL:R_POOL + B, 0:BL].set(pool)

    # Head bias replicated over the padded output rows.
    slab = slab.at[R_BHEAD:R_BHEAD + OUT_ROWS, 0:NC].set(
        jnp.broadcast_to(b_head, (OUT_ROWS, NC)))
    return slab


# ----------------------------- reference ---------------------------------
def reference_forward(x, params):
    """Plain-JAX reference for correctness checking."""
    emb_w, w_q, w_k, w_v, kern, w_out, w_head, b_head = params
    idx = jnp.argmax(x, axis=2)                                   # [B, L]
    onehot = jax.nn.one_hot(idx, C, dtype=jnp.float32)            # [B, L, C]
    emb = onehot @ emb_w                                          # [B, L, D]
    q = emb @ w_q
    k = emb @ w_k
    v = emb @ w_v
    vc = v * kern[0][None, None, :]
    for t in range(1, KW):
        shifted = jnp.concatenate(
            [jnp.zeros((x.shape[0], t, D), jnp.float32), v[:, :L - t, :]],
            axis=1)
        vc = vc + shifted * kern[t][None, None, :]
    y = q * (k * vc)
    y = y @ w_out + emb
    pooled = jnp.mean(y, axis=1)                                  # [B, D]
    logits = pooled @ w_head + b_head[0]
    probs = jax.nn.softmax(logits, axis=-1)
    already_normalized = jnp.allclose(
        jnp.sum(probs, axis=-1), jnp.ones(logits.shape[0]),
        rtol=1e-5, atol=1e-8)
    return jnp.where(already_normalized, logits, probs)


def make_params(key):
    k1, k2, k3, k4, k5, k6, k7 = jax.random.split(key, 7)
    emb = jax.random.normal(k1, (C, D), jnp.float32) * 0.5
    scale = 1.0 / D ** 0.5
    w_q = jax.random.normal(k2, (D, D), jnp.float32) * scale
    w_k = jax.random.normal(k3, (D, D), jnp.float32) * scale
    w_v = jax.random.normal(k4, (D, D), jnp.float32) * scale
    kern = jax.random.normal(k5, (KW, D), jnp.float32) * 0.3
    w_out = jax.random.normal(k6, (D, D), jnp.float32) * scale
    w_head = jax.random.normal(k7, (D, NC), jnp.float32) * scale
    b_head = jnp.zeros((1, NC), jnp.float32)
    return emb, w_q, w_k, w_v, kern, w_out, w_head, b_head


if __name__ == "__main__":
    key = jax.random.PRNGKey(0)
    kx, kp = jax.random.split(key)
    # Captum-style input: [batch, seq_len, channels]; not necessarily one-hot.
    x = jax.random.normal(kx, (B, L, C), jnp.float32)
    params = make_params(kp)
    slab = pack_slab(params)   # one-time offline weight packing

    out = jax.block_until_ready(hyena_dna_forward_wrapper(x, slab))
    ref = jax.block_until_ready(reference_forward(x, params))
    assert out.shape == (B, NC)
    assert jnp.allclose(out, ref, atol=1e-4, rtol=1e-4), (out, ref)

    print("KERNEL_OK")
</pallas_src>

<mosaic_0001>
module attributes {stable_mosaic.version = 11 : i64} {
  func.func @hyena_dna_kernel(%arg0: memref<32x5xf32, #tpu.memory_space<vmem>>, %arg1: memref<160x128xf32, #tpu.memory_space<vmem>>, %arg2: memref<8x128xf32, #tpu.memory_space<vmem>>) attributes {dimension_semantics = [], scalar_prefetch = 0 : i64, scratch_operands = 0 : i64, tpu.core_type = #tpu.core_type<tc>} {
    %c0 = arith.constant 0 : index
    %c0_0 = arith.constant 0 : index
    %0 = vector.load %arg0[%c0, %c0_0] : memref<32x5xf32, #tpu.memory_space<vmem>>, vector<32x5xf32>
    %c0_1 = arith.constant 0 : index
    %c0_2 = arith.constant 0 : index
    %1 = vector.load %arg1[%c0_1, %c0_2] : memref<160x128xf32, #tpu.memory_space<vmem>>, vector<8x128xf32>
    %c8 = arith.constant 8 : index
    %c0_3 = arith.constant 0 : index
    %2 = vector.load %arg1[%c8, %c0_3] : memref<160x128xf32, #tpu.memory_space<vmem>>, vector<64x32xf32>
    %c72 = arith.constant 72 : index
    %c0_4 = arith.constant 0 : index
    %3 = vector.load %arg1[%c72, %c0_4] : memref<160x128xf32, #tpu.memory_space<vmem>>, vector<32x32xf32>
    %c104 = arith.constant 104 : index
    %c0_5 = arith.constant 0 : index
    %4 = vector.load %arg1[%c104, %c0_5] : memref<160x128xf32, #tpu.memory_space<vmem>>, vector<32x128xf32>
    %c136 = arith.constant 136 : index
    %c0_6 = arith.constant 0 : index
    %5 = vector.load %arg1[%c136, %c0_6] : memref<160x128xf32, #tpu.memory_space<vmem>>, vector<8x32xf32>
    %c144 = arith.constant 144 : index
    %c0_7 = arith.constant 0 : index
    %6 = vector.load %arg1[%c144, %c0_7] : memref<160x128xf32, #tpu.memory_space<vmem>>, vector<8x32xf32>
    %c152 = arith.constant 152 : index
    %c0_8 = arith.constant 0 : index
    %7 = vector.load %arg1[%c152, %c0_8] : memref<160x128xf32, #tpu.memory_space<vmem>>, vector<8x128xf32>
    %8 = tpu.iota {dimensions = array<i32: 1>} : vector<32x5xi32>
    %cst = arith.constant dense<0xFF800000> : vector<32xf32>
    %9 = vector.multi_reduction <maximumf>, %0, %cst [1] : vector<32x5xf32> to vector<32xf32>
    %10 = vector.shape_cast %9 : vector<32xf32> to vector<32x1xf32>
    %11 = vector.broadcast %10 : vector<32x1xf32> to vector<32x5xf32>
    %12 = arith.cmpf oeq, %0, %11 : vector<32x5xf32>
    %c5_i32 = arith.constant 5 : i32
    %13 = vector.broadcast %c5_i32 : i32 to vector<32x5xi32>
    %14 = arith.select %12, %8, %13 : vector<32x5xi1>, vector<32x5xi32>
    %cst_9 = arith.constant dense<2147483647> : vector<32xi32>
    %15 = vector.multi_reduction <minsi>, %14, %cst_9 [1] : vector<32x5xi32> to vector<32xi32>
    %16 = vector.shape_cast %15 : vector<32xi32> to vector<32x1xi32>
    %17 = tpu.iota {dimensions = array<i32: 1>} : vector<32x8xi32>
    %18 = vector.broadcast %16 : vector<32x1xi32> to vector<32x8xi32>
    %19 = arith.cmpi eq, %17, %18 : vector<32x8xi32>
    %20 = arith.extui %19 : vector<32x8xi1> to vector<32x8xi32>
    %21 = arith.sitofp %20 : vector<32x8xi32> to vector<32x8xf32>
    %cst_10 = arith.constant dense<0.000000e+00> : vector<32x128xf32>
    %22 = tpu.matmul %21, %1, %cst_10 {dimension_numbers = #tpu.dot_dimension_numbers<[1], [0], [0], [1], [0, 0, 1, 1], [], []>} : vector<32x8xf32>, vector<8x128xf32>, vector<32x128xf32> -> vector<32x128xf32>
    %23 = vector.extract_strided_slice %22 {offsets = [0, 0], sizes = [32, 32], strides = [1, 1]} : vector<32x128xf32> to vector<32x32xf32>
    %24 = vector.extract_strided_slice %22 {offsets = [0, 32], sizes = [32, 32], strides = [1, 1]} : vector<32x128xf32> to vector<32x32xf32>
    %25 = vector.extract_strided_slice %22 {offsets = [0, 64], sizes = [32, 32], strides = [1, 1]} : vector<32x128xf32> to vector<32x32xf32>
    %26 = vector.extract_strided_slice %22 {offsets = [0, 96], sizes = [32, 32], strides = [1, 1]} : vector<32x128xf32> to vector<32x32xf32>
    %cst_11 = arith.constant dense<0.000000e+00> : vector<64x32xf32>
    %27 = tpu.matmul %2, %25, %cst_11 {dimension_numbers = #tpu.dot_dimension_numbers<[1], [0], [0], [1], [0, 0, 1, 1], [], []>} : vector<64x32xf32>, vector<32x32xf32>, vector<64x32xf32> -> vector<64x32xf32>
    %28 = vector.extract_strided_slice %5 {offsets = [0, 0], sizes = [1, 32], strides = [1, 1]} : vector<8x32xf32> to vector<1x32xf32>
    %29 = vector.broadcast %28 : vector<1x32xf32> to vector<32x32xf32>
    %30 = arith.mulf %25, %29 : vector<32x32xf32>
    %31 = vector.extract_strided_slice %27 {offsets = [0, 0], sizes = [32, 32], strides = [1, 1]} : vector<64x32xf32> to vector<32x32xf32>
    %32 = vector.extract_strided_slice %5 {offsets = [1, 0], sizes = [1, 32], strides = [1, 1]} : vector<8x32xf32> to vector<1x32xf32>
    %33 = vector.broadcast %32 : vector<1x32xf32> to vector<32x32xf32>
    %34 = arith.mulf %31, %33 : vector<32x32xf32>
    %35 = arith.addf %30, %34 : vector<32x32xf32>
    %36 = vector.extract_strided_slice %27 {offsets = [32, 0], sizes = [32, 32], strides = [1, 1]} : vector<64x32xf32> to vector<32x32xf32>
    %37 = vector.extract_strided_slice %5 {offsets = [2, 0], sizes = [1, 32], strides = [1, 1]} : vector<8x32xf32> to vector<1x32xf32>
    %38 = vector.broadcast %37 : vector<1x32xf32> to vector<32x32xf32>
    %39 = arith.mulf %36, %38 : vector<32x32xf32>
    %40 = arith.addf %35, %39 : vector<32x32xf32>
    %41 = arith.mulf %24, %40 : vector<32x32xf32>
    %42 = arith.mulf %23, %41 : vector<32x32xf32>
    %cst_12 = arith.constant dense<0.000000e+00> : vector<32x32xf32>
    %43 = tpu.matmul %42, %3, %cst_12 {dimension_numbers = #tpu.dot_dimension_numbers<[1], [0], [0], [1], [0, 0, 1, 1], [], []>} : vector<32x32xf32>, vector<32x32xf32>, vector<32x32xf32> -> vector<32x32xf32>
    %44 = arith.addf %43, %26 : vector<32x32xf32>
    %cst_13 = arith.constant dense<0.000000e+00> : vector<8x32xf32>
    %45 = tpu.matmul %6, %44, %cst_13 {dimension_numbers = #tpu.dot_dimension_numbers<[1], [0], [0], [1], [0, 0, 1, 1], [], []>} : vector<8x32xf32>, vector<32x32xf32>, vector<8x32xf32> -> vector<8x32xf32>
    %cst_14 = arith.constant dense<0.000000e+00> : vector<8x128xf32>
    %46 = tpu.matmul %45, %4, %cst_14 {dimension_numbers = #tpu.dot_dimension_numbers<[1], [0], [0], [1], [0, 0, 1, 1], [], []>} : vector<8x32xf32>, vector<32x128xf32>, vector<8x128xf32> -> vector<8x128xf32>
    %47 = arith.addf %46, %7 : vector<8x128xf32>
    %c0_15 = arith.constant 0 : index
    %c0_16 = arith.constant 0 : index
    %48 = vector.load %arg2[%c0_15, %c0_16] : memref<8x128xf32, #tpu.memory_space<vmem>>, vector<8x128xf32>
    tpu.vector_store %arg2[%c0_15, %c0_16], %47 {strides = array<i32>} : memref<8x128xf32, #tpu.memory_space<vmem>>, vector<8x128xf32>,
    return
  }
}

</mosaic_0001>

<bundles_post_ra>
// kernel: hyena_dna_forward_wrapper.1
= control target key start
LH: loop header
LB: loop body
LE: loop exit
PB: predicated region body
PF: predicated region fallthrough
CT: control target
= control target key end

     0   :  { %7 = vsyncpa [#allocation3], 0  ;;  %s949_s9 = smov [#allocation2]   ;;  %s1091_s0 = inlined_call_operand.vmem [shape: f32[32,5], index: 0, kind: input, shape index: {}]   ;;  %s1092_s1 = inlined_call_operand.hbm [shape: f32[160,128], index: 1, kind: input, shape index: {}]   ;;  %s1093_s2 = inlined_call_operand.vmem [shape: f32[8,128], index: 2, kind: output, shape index: {}]  }
   0x1   :  { %s15_s10 = sshll.u32 %s949_s9, 4  ;;  %s925_s13 = scalar_lea.hbm %s1092_s1, 2560  ;;  %s16_s10 = int_to_ptr.vmem [resolvable:$true] %s15_s10 }
   0x2   :  { %p926_p0 = scmp.ne.s32.totalorder %s1092_s1, %s925_s13  ;;  %p929_p1 = scmp.lt.u32.totalorder %s925_s13, %s1092_s1 }
   0x4   :  { %p931_p2 = pnand %p929_p1, %p926_p0 }
   0x6   :  { %934 = shalt.err (!%p931_p2)
}
   0x7   :  { %s935_s18 = scalar_lea.vmem %s16_s10, 2560  ;;  %p940_p4 = scmp.lt.s32.totalorder %s16_s10, %s16_s10 }
   0x8   :  { %p936_p3 = scmp.ne.s32.totalorder %s16_s10, %s935_s18  ;;  %p941_p5 = scmp.lt.s32.totalorder %s935_s18, %s935_s18 }
   0xa   :  { %p942_p6 = por %p941_p5, %p940_p4 }
   0xc   :  { %p943_p7 = pnand %p942_p6, %p936_p3 }
   0xe   :  { %946 = shalt.err (!%p943_p7)
}
   0xf   :  { %s950_s19 = smov 128   ;;  %s951_s20 = smov 8  }
  0x10   :  { %21 = dma.hbm_to_vmem [thread:$0]  %s1092_s1, 2560, %s16_s10, [#allocation3], %s950_s19, %s950_s19, %s951_s20  }
  0x11   :  { %947 = dma.done.wait [#allocation3], 2560  }
  0x12   :  { %948 = vsyncadd [#allocation3], 4294964736  ;;  %vm51_vm0 = vcmask 39936   ;;  %v25_v0 = vld [vmem:[%s1091_s0] sm:$0xff]  ;;  %v27_v1 = vld [vmem:[%s1091_s0 + $0x10] sm:$0xff]  ;;  %v49_v8 = vlaneseq  ;;  %vm144_vm9 = vcmask 64512  }
  0x13   :  { %v26_v2 = vld [vmem:[%s1091_s0 + $0x8] sm:$0xff]  ;;  %v52_v3 = vsel %vm51_vm0, %v25_v0, -inf  ;;  %v58_v4 = vsel %vm51_vm0, %v27_v1, -inf  ;;  %v28_v5 = vld [vmem:[%s1091_s0 + $0x18] sm:$0xff]  ;;  %v952_v61 = vmov 0.0   ;;  %vm258_vm14 = vcmask 261120  }
  0x14   :  { %53 = vmax.xlane.f32.xlu0 %v52_v3  ;;  %59 = vmax.xlane.f32.xlu1 %v58_v4  ;;  %v55_v6 = vsel %vm51_vm0, %v26_v2, -inf  ;;  %v61_v7 = vsel %vm51_vm0, %v28_v5, -inf  ;;  %v1002_v9 = vand.u32 127, %v49_v8  ;;  %v29_v46 = vld [vmem:[#allocation2] sm:$0xff]  ;;  %s953_s0 = smov 64   ;;  %s954_s30 = smov 96  }
  0x15   :  { %814 = vmatprep.subr.mxu0 %v29_v46  ;;  %s955_s3 = smov 32   ;;  %vm957_vm15 = vmmov 0  }
  0x16   :  { %815 = vmatpush3.msra.mxu0 %v29_v46 }
  0x18   :  { %56 = vmax.xlane.f32.xlu0 %v55_v6  ;;  %62 = vmax.xlane.f32.xlu1 %v61_v7 }
  0xa1   :  { %v54_v10 = vpop.xlane.xlu0 %53  ;;  %v60_v11 = vpop.xlane.xlu1 %59 }
  0xa2   :  { %vm64_vm1 = vcmp.eq.f32.partialorder %v25_v0, %v54_v10  ;;  %vm66_vm2 = vcmp.eq.f32.partialorder %v27_v1, %v60_v11  ;;  %v389_v11 = vshrl.u32 %v49_v8, 7 }
  0xa3   :  { %v68_v12 = vsel %vm64_vm1, %v1002_v9, 5  ;;  %v70_v13 = vsel %vm66_vm2, %v1002_v9, 5 }
  0xa4   :  { %v72_v14 = vsel %vm51_vm0, %v68_v12, 2147483647  ;;  %v102_v15 = vsel %vm51_vm0, %v70_v13, 2147483647  ;;  %v30_v12 = vld [vmem:[#allocation2 + $0x8] sm:$0xff] }
  0xa5   :  { %v57_v16 = vpop.xlane.xlu0 %56  ;;  %v63_v17 = vpop.xlane.xlu1 %62  ;;  %v74_v18 = vshra.s32 %v72_v14, 16  ;;  %v104_v19 = vshra.s32 %v102_v15, 16  ;;  %v73_v30 = vand.u32 65535, %v72_v14  ;;  %v103_v34 = vand.u32 65535, %v102_v15  ;;  %830 = vmatprep.mubr.msk.f32.mxu1 %vm258_vm14, %v30_v12 }
  0xa6   :  { %vm65_vm3 = vcmp.eq.f32.partialorder %v26_v2, %v57_v16  ;;  %vm67_vm4 = vcmp.eq.f32.partialorder %v28_v5, %v63_v17  ;;  %v390_v15 = vsub.s32 0, %v389_v11  ;;  %v46_v17 = vld [vmem:[#allocation2 + $0x88] sm:$0xff] }
  0xa7   :  { %v69_v20 = vsel %vm65_vm3, %v1002_v9, 5  ;;  %v71_v21 = vsel %vm67_vm4, %v1002_v9, 5  ;;  %v76_v22 = vcvt.s32.f32 %v74_v18  ;;  %v106_v25 = vcvt.s32.f32 %v104_v19 }
  0xa8   :  { %v87_v23 = vsel %vm51_vm0, %v69_v20, 2147483647  ;;  %v117_v24 = vsel %vm51_vm0, %v71_v21, 2147483647  ;;  %v75_v32 = vcvt.s32.f32 %v73_v30  ;;  %v105_v39 = vcvt.s32.f32 %v103_v34  ;;  %v34_v30 = vld [vmem:[#allocation2 + $0x28] sm:$0xff] }
  0xa9   :  { %77 = vmin.xlane.f32.xlu0 %v76_v22  ;;  %v89_v26 = vshra.s32 %v87_v23, 16  ;;  %v119_v27 = vshra.s32 %v117_v24, 16  ;;  %v88_v33 = vand.u32 65535, %v87_v23  ;;  %v118_v40 = vand.u32 65535, %v117_v24 }
  0xaa   :  { %v391_v18 = vrot.slane %v46_v17, %v390_v15  ;;  %v402_v34 = vsub.s32 1, %v389_v11  ;;  %v38_v15 = vld [vmem:[#allocation2 + $0x48] sm:$0xff] }
  0xab   :  { %v91_v28 = vcvt.s32.f32 %v89_v26  ;;  %v121_v29 = vcvt.s32.f32 %v119_v27  ;;  %v90_v38 = vcvt.s32.f32 %v88_v33  ;;  %v120_v44 = vcvt.s32.f32 %v118_v40  ;;  %v31_v27 = vld [vmem:[#allocation2 + $0x10] sm:$0xff]  ;;  %v37_v33 = vld [vmem:[#allocation2 + $0x40] sm:$0xff] }
  0xad   :  { %107 = vmin.xlane.f32.xlu0 %v106_v25  ;;  %92 = vmin.xlane.f32.xlu1 %v91_v28 }
  0xb1   :  { %122 = vmin.xlane.f32.xlu1 %v121_v29 }
 0x136   :  { %v78_v31 = vpop.xlane.xlu0 %77 }
 0x137   :  { %vm79_vm5 = vcmp.eq.f32.partialorder %v76_v22, %v78_v31  ;;  %v84_v47 = vcvt.f32.s32 %v78_v31  ;;  %v35_v31 = vld [vmem:[#allocation2 + $0x30] sm:$0xff] }
 0x138   :  { %v80_v35 = vsel %vm79_vm5, %v75_v32, inf  ;;  %v36_v32 = vld [vmem:[#allocation2 + $0x38] sm:$0xff] }
 0x139   :  { %81 = vmin.xlane.f32.xlu0 %v80_v35  ;;  %v85_v51 = vshll.u32 %v84_v47, 16  ;;  %v403_v35 = vrot.slane %v46_v17, %v402_v34 }
 0x13a   :  { %v93_v36 = vpop.xlane.xlu1 %92  ;;  %v108_v37 = vpop.xlane.xlu0 %107 }
 0x13b   :  { %vm94_vm6 = vcmp.eq.f32.partialorder %v91_v28, %v93_v36  ;;  %vm109_vm7 = vcmp.eq.f32.partialorder %v106_v25, %v108_v37  ;;  %v99_v48 = vcvt.f32.s32 %v93_v36  ;;  %v114_v49 = vcvt.f32.s32 %v108_v37  ;;  %v32_v28 = vld [vmem:[#allocation2 + $0x18] sm:$0xff] }
 0x13c   :  { %v95_v41 = vsel %vm94_vm6, %v90_v38, inf  ;;  %v110_v42 = vsel %vm109_vm7, %v105_v39, inf  ;;  %v430_v39 = vsub.s32 2, %v389_v11 }
 0x13d   :  { %96 = vmin.xlane.f32.xlu1 %v95_v41  ;;  %111 = vmin.xlane.f32.xlu0 %v110_v42  ;;  %v100_v54 = vshll.u32 %v99_v48, 16  ;;  %v115_v55 = vshll.u32 %v114_v49, 16 }
 0x13e   :  { %v123_v43 = vpop.xlane.xlu1 %122 }
 0x13f   :  { %vm124_vm8 = vcmp.eq.f32.partialorder %v121_v29, %v123_v43  ;;  %v129_v58 = vcvt.f32.s32 %v123_v43  ;;  %v33_v29 = vld [vmem:[#allocation2 + $0x20] sm:$0xff] }
 0x140   :  { %v125_v45 = vsel %vm124_vm8, %v120_v44, inf  ;;  %v431_v44 = vrot.slane %v46_v17, %v430_v39  ;;  %v39_v17 = vld [vmem:[#allocation2 + $0x50] sm:$0xff]  ;;  %v44_v39 = vld [vmem:[#allocation2 + $0x78] sm:$0xff] }
 0x141   :  { %126 = vmin.xlane.f32.xlu1 %v125_v45  ;;  %v130_v2 = vshll.u32 %v129_v58, 16 }
 0x1c6   :  { %v82_v50 = vpop.xlane.xlu0 %81 }
 0x1c7   :  { %v83_v52 = vcvt.f32.s32 %v82_v50 }
 0x1c9   :  { %v86_v53 = vadd.s32 %v85_v51, %v83_v52 }
 0x1ca   :  { %v97_v56 = vpop.xlane.xlu1 %96  ;;  %v112_v57 = vpop.xlane.xlu0 %111 }
 0x1cb   :  { %v98_v59 = vcvt.f32.s32 %v97_v56  ;;  %v113_v60 = vcvt.f32.s32 %v112_v57  ;;  %vm132_vm10 = vcmp.eq.s32.totalorder %v1002_v9, %v86_v53 }
 0x1cc   :  { %v757_v62 = vsel %vm132_vm10, 1.0, %v952_v61 }
 0x1cd   :  { %v101_v63 = vadd.s32 %v100_v54, %v98_v59  ;;  %v116_v0 = vadd.s32 %v115_v55, %v113_v60  ;;  %816 = vmatprep.mubr.msk.f32.mxu0 %vm144_vm9, %v757_v62 }
 0x1ce   :  { %v127_v1 = vpop.xlane.xlu1 %126 }
 0x1cf   :  { %v128_v3 = vcvt.f32.s32 %v127_v1  ;;  %vm133_vm11 = vcmp.eq.s32.totalorder %v1002_v9, %v101_v63  ;;  %vm134_vm12 = vcmp.eq.s32.totalorder %v1002_v9, %v116_v0 }
 0x1d0   :  { %v758_v4 = vsel %vm133_vm11, 1.0, %v952_v61  ;;  %v759_v5 = vsel %vm134_vm12, 1.0, %v952_v61 }
 0x1d1   :  { %v131_v6 = vadd.s32 %v130_v2, %v128_v3  ;;  %817 = vmatmul.mubr.msk.f32.vlgmr.msra.gmra.mrb[0].mxu0 %vm144_vm9, %v758_v4 }
 0x1d2   :  { %819 = vmatprep.mubr.msk.f32.mxu0 %vm144_vm9, %v759_v5 }
 0x1d3   :  { %vm135_vm13 = vcmp.eq.s32.totalorder %v1002_v9, %v131_v6 }
 0x1d4   :  { %v760_v7 = vsel %vm135_vm13, 1.0, %v952_v61 }
 0x1d5   :  { %820 = vmatmul.mubr.msk.f32.gmra.mrb[2].mxu0 %vm144_vm9, %v760_v7 }
 0x2a4   :  { %v1024_v10 = vpop.f32.mrb[0].mxu0 }
 0x2a5   :  { %v1027_v13 = vpop.f32.mrb[1].mxu0 }
 0x2a6   :  { %v915_v14 = vpack.i.bf16 %v1024_v10, %v1027_v13 }
 0x2a8   :  { %916 = vrot.lane.b32.xlu0 %v915_v14, %s953_s0  ;;  %v1033_v9 = vpop.f32.mrb[2].mxu0 }
 0x2a9   :  { %v1035_v16 = vpop.f32.mrb[3].mxu0 }
 0x2aa   :  { %v920_v8 = vpack.i.bf16 %v1033_v9, %v1035_v16 }
 0x2ac   :  { %921 = vrot.lane.b32.xlu1 %v920_v8, %s953_s0 }
 0x2b0   :  { %393 = vrot.lane.b32.xlu1 %v391_v18, %s953_s0  ;;  %v886_v18 = vpack.c.bf16 %v39_v17, %v38_v15 }
 0x2b2   :  { %887 = vmatprep.subr.bf16.mxu0 %v886_v18 }
 0x2b3   :  { %889 = vmatpush3.bf16.msra.mxu0 %v886_v18 }
 0x31a   :  { %v917_v19 = vpop.permute.xlu0 %916 }
 0x31b   :  { %v919_v20 = vunpack.i.h.bf16 %v917_v19  ;;  %v918_v21 = vunpack.i.l.bf16 %v917_v19  ;;  %v40_v19 = vld [vmem:[#allocation2 + $0x58] sm:$0xff] }
 0x31d   :  { %v878_v22 = vpack.c.bf16 %v919_v20, %v918_v21  ;;  %v41_v20 = vld [vmem:[#allocation2 + $0x60] sm:$0xff] }
 0x31e   :  { %v922_v23 = vpop.permute.xlu1 %921  ;;  %v890_v21 = vpack.c.bf16 %v41_v20, %v40_v19 }
 0x31f   :  { %v924_v24 = vunpack.i.h.bf16 %v922_v23  ;;  %v923_v25 = vunpack.i.l.bf16 %v922_v23  ;;  %879 = vmatprep.subr.bf16.mxu1 %v878_v22 }
 0x320   :  { %881 = vmatpush3.bf16.msra.mxu1 %v878_v22  ;;  %891 = vmatprep.subr.bf16.mxu0 %v890_v21 }
 0x321   :  { %v882_v26 = vpack.c.bf16 %v924_v24, %v923_v25  ;;  %893 = vmatpush3.bf16.msra.mxu0 %v890_v21 }
 0x322   :  { %v394_v54 = vpop.permute.xlu1 %393 }
 0x323   :  { %883 = vmatprep.subr.bf16.mxu1 %v882_v26  ;;  %v397_v58 = vmul.f32 %v1024_v10, %v394_v54  ;;  %v396_v60 = vmul.f32 %v394_v54, %v1027_v13  ;;  %v399_v1 = vmul.f32 %v1033_v9, %v394_v54  ;;  %v398_v4 = vmul.f32 %v394_v54, %v1035_v16  ;;  %v47_v54 = vld [vmem:[#allocation2 + $0x90] sm:$0xff] }
 0x324   :  { %885 = vmatpush3.bf16.msra.mxu1 %v882_v26 }
 0x327   :  { %831 = vmatmul.mubr.msk.f32.vlgmr.msra.gmra.mrb[0].mxu1 %vm258_vm14, %v31_v27 }
 0x328   :  { %833 = vmatprep.mubr.msk.f32.mxu1 %vm258_vm14, %v32_v28 }
 0x32b   :  { %834 = vmatmul.mubr.msk.f32.gmra.mrb[2].mxu1 %vm258_vm14, %v33_v29 }
 0x32c   :  { %836 = vmatprep.mubr.msk.f32.mxu1 %vm258_vm14, %v34_v30 }
 0x32f   :  { %837 = vmatmul.mubr.msk.f32.gmra.mrb[4].mxu1 %vm258_vm14, %v35_v31 }
 0x330   :  { %839 = vmatprep.mubr.msk.f32.mxu1 %vm258_vm14, %v36_v32 }
 0x333   :  { %840 = vmatmul.mubr.msk.f32.gmra.mrb[6].mxu1 %vm258_vm14, %v37_v33 }
 0x334   :  { %875 = vmatprep.mubr.msk.f32.mxu1 %vm957_vm15, %v952_v61 }
 0x3fa   :  { %v832_v36 = vpop.f32.mrb[0].mxu1 }
 0x3fb   :  { %v405_v37 = vmul.f32 %v832_v36, %v403_v35  ;;  %v349_v38 = vpop.f32.mrb[1].mxu1 }
 0x3fc   :  { %v404_v40 = vmul.f32 %v403_v35, %v349_v38  ;;  %v956_v38 = vmov 0.0|0.0  }
 0x3fd   :  { %414 = vrot.lane.b32.xlu0 %v405_v37, %s953_s0  ;;  %894 = vmatprep.subr.bf16.mxu0 %v956_v38 }
 0x3fe   :  { %412 = vrot.lane.b32.xlu1 %v404_v40, %s953_s0  ;;  %v835_v41 = vpop.f32.mrb[2].mxu1  ;;  %900 = vmatprep.subr.bf16.mxu1 %v956_v38 }
 0x3ff   :  { %v407_v42 = vmul.f32 %v835_v41, %v403_v35  ;;  %v359_v43 = vpop.f32.mrb[3].mxu1  ;;  %v45_v41 = vld [vmem:[#allocation2 + $0x80] sm:$0xff] }
 0x400   :  { %v406_v45 = vmul.f32 %v403_v35, %v359_v43 }
 0x401   :  { %418 = vrot.lane.b32.xlu0 %v407_v42, %s953_s0 }
 0x402   :  { %416 = vrot.lane.b32.xlu1 %v406_v45, %s953_s0  ;;  %v838_v46 = vpop.f32.mrb[4].mxu1 }
 0x403   :  { %v433_v47 = vmul.f32 %v838_v46, %v431_v44  ;;  %v369_v48 = vpop.f32.mrb[5].mxu1 }
 0x404   :  { %v432_v49 = vmul.f32 %v431_v44, %v369_v48 }
 0x405   :  { %442 = vrot.lane.b32.xlu0 %v433_v47, %s953_s0 }
 0x406   :  { %440 = vrot.lane.b32.xlu1 %v432_v49, %s953_s0  ;;  %v841_v50 = vpop.f32.mrb[6].mxu1 }
 0x407   :  { %v435_v51 = vmul.f32 %v841_v50, %v431_v44  ;;  %v379_v52 = vpop.f32.mrb[7].mxu1 }
 0x408   :  { %v434_v53 = vmul.f32 %v431_v44, %v379_v52 }
 0x409   :  { %446 = vrot.lane.b32.xlu0 %v435_v51, %s953_s0 }
 0x40a   :  { %444 = vrot.lane.b32.xlu1 %v434_v53, %s953_s0 }
 0x46f   :  { %v415_v55 = vpop.permute.xlu0 %414 }
 0x470   :  { %v413_v56 = vpop.permute.xlu1 %412  ;;  %v425_v62 = vadd.f32 %v415_v55, %v397_v58 }
 0x471   :  { %v424_v63 = vadd.f32 %v413_v56, %v396_v60 }
 0x473   :  { %v419_v57 = vpop.permute.xlu0 %418 }
 0x474   :  { %v417_v59 = vpop.permute.xlu1 %416  ;;  %v427_v6 = vadd.f32 %v419_v57, %v399_v1  ;;  %v48_v57 = vld [vmem:[#allocation2 + $0x98] sm:$0xff] }
 0x475   :  { %v426_v7 = vadd.f32 %v417_v59, %v398_v4 }
 0x477   :  { %v443_v0 = vpop.permute.xlu0 %442 }
 0x478   :  { %v453_v2 = vadd.f32 %v443_v0, %v425_v62  ;;  %v441_v3 = vpop.permute.xlu1 %440 }
 0x479   :  { %v452_v5 = vadd.f32 %v441_v3, %v424_v63 }
 0x47a   :  { %462 = vrot.lane.b32.xlu0 %v453_v2, %s954_s30 }
 0x47b   :  { %v447_v11 = vpop.permute.xlu0 %446  ;;  %460 = vrot.lane.b32.xlu1 %v452_v5, %s954_s30 }
 0x47c   :  { %v455_v12 = vadd.f32 %v447_v11, %v427_v6  ;;  %v445_v14 = vpop.permute.xlu1 %444 }
 0x47d   :  { %v454_v8 = vadd.f32 %v445_v14, %v426_v7 }
 0x47e   :  { %466 = vrot.lane.b32.xlu0 %v455_v12, %s954_s30 }
 0x47f   :  { %464 = vrot.lane.b32.xlu1 %v454_v8, %s954_s30 }
 0x4ec   :  { %v463_v22 = vpop.permute.xlu0 %462 }
 0x4ed   :  { %v473_v23 = vmul.f32 %v1024_v10, %v463_v22  ;;  %v461_v24 = vpop.permute.xlu1 %460 }
 0x4ee   :  { %v472_v25 = vmul.f32 %v461_v24, %v1027_v13 }
 0x4ef   :  { %482 = vrot.lane.b32.xlu0 %v473_v23, %s954_s30 }
 0x4f0   :  { %v467_v26 = vpop.permute.xlu0 %466  ;;  %480 = vrot.lane.b32.xlu1 %v472_v25, %s954_s30 }
 0x4f1   :  { %v475_v27 = vmul.f32 %v1033_v9, %v467_v26  ;;  %v465_v28 = vpop.permute.xlu1 %464 }
 0x4f2   :  { %v474_v29 = vmul.f32 %v465_v28, %v1035_v16 }
 0x4f3   :  { %486 = vrot.lane.b32.xlu0 %v475_v27, %s954_s30 }
 0x4f4   :  { %484 = vrot.lane.b32.xlu1 %v474_v29, %s954_s30 }
 0x4f7   :  { %498 = vrot.lane.b32.xlu0 %v1024_v10, %s955_s3 }
 0x4f8   :  { %496 = vrot.lane.b32.xlu1 %v1027_v13, %s955_s3 }
 0x4fb   :  { %502 = vrot.lane.b32.xlu0 %v1033_v9, %s955_s3 }
 0x4fc   :  { %500 = vrot.lane.b32.xlu1 %v1035_v16, %s955_s3 }
 0x561   :  { %v483_v30 = vpop.permute.xlu0 %482 }
 0x562   :  { %v481_v31 = vpop.permute.xlu1 %480  ;;  %v493_v33 = vmul.f32 %v1024_v10, %v483_v30  ;;  %v42_v10 = vld [vmem:[#allocation2 + $0x68] sm:$0xff] }
 0x563   :  { %v492_v32 = vmul.f32 %v481_v31, %v1027_v13  ;;  %v43_v13 = vld [vmem:[#allocation2 + $0x70] sm:$0xff] }
 0x564   :  { %v901_v40 = vpack.c.bf16 %v43_v13, %v42_v10 }
 0x565   :  { %v487_v34 = vpop.permute.xlu0 %486  ;;  %850 = vmatprep.mubr.msk.f32.mxu0 %vm258_vm14, %v492_v32 }
 0x566   :  { %851 = vmatmul.mubr.msk.f32.vlgmr.msra.gmra.mrb[4].mxu0 %vm258_vm14, %v493_v33  ;;  %v485_v35 = vpop.permute.xlu1 %484  ;;  %v495_v37 = vmul.f32 %v1033_v9, %v487_v34  ;;  %902 = vmatpush3.bf16.msra.mxu1 %v901_v40 }
 0x567   :  { %v494_v36 = vmul.f32 %v485_v35, %v1035_v16  ;;  %v904_v16 = vpack.c.bf16 %v45_v41, %v44_v39  ;;  %903 = vmatprep.subr.bf16.mxu1 %v956_v38 }
 0x569   :  { %853 = vmatprep.mubr.msk.f32.mxu0 %vm258_vm14, %v494_v36  ;;  %v499_v9 = vpop.permute.xlu0 %498 }
 0x56a   :  { %854 = vmatmul.mubr.msk.f32.gmra.mrb[6].mxu0 %vm258_vm14, %v495_v37  ;;  %905 = vmatpush3.bf16.msra.mxu1 %v904_v16  ;;  %v497_v42 = vpop.permute.xlu1 %496 }
 0x56b   :  { %864 = vmatprep.mubr.msk.f32.mxu0 %vm957_vm15, %v952_v61 }
 0x56d   :  { %v503_v47 = vpop.permute.xlu0 %502 }
 0x56e   :  { %v501_v50 = vpop.permute.xlu1 %500 }
 0x639   :  { %v852_v43 = vpop.f32.mrb[4].mxu0 }
 0x63a   :  { %v592_v44 = vadd.f32 %v852_v43, %v499_v9  ;;  %v586_v45 = vpop.f32.mrb[5].mxu0 }
 0x63b   :  { %v587_v46 = vadd.f32 %v586_v45, %v497_v42 }
 0x63d   :  { %v895_v48 = vpack.c.bf16 %v592_v44, %v587_v46  ;;  %v855_v49 = vpop.f32.mrb[6].mxu0 }
 0x63e   :  { %v602_v61 = vadd.f32 %v855_v49, %v503_v47  ;;  %v596_v51 = vpop.f32.mrb[7].mxu0 }
 0x63f   :  { %v597_v52 = vadd.f32 %v596_v51, %v501_v50  ;;  %896 = vmatpush3.bf16.msra.mxu0 %v895_v48 }
 0x640   :  { %897 = vmatprep.subr.bf16.mxu0 %v956_v38 }
 0x641   :  { %v898_v53 = vpack.c.bf16 %v602_v61, %v597_v52 }
 0x643   :  { %899 = vmatpush3.bf16.msra.mxu0 %v898_v53 }
 0x646   :  { %865 = vmatmul.mubr.msk.f32.vlgmr.msra.gmra.mrb[8].mxu0 %vm258_vm14, %v47_v54 }
 0x719   :  { %v674_v55 = vpop.f32.mrb[8].mxu0 }
 0x71a   :  { %v866_v56 = vpop.f32.mrb[9].mxu0  ;;  %876 = vmatmul.mubr.msk.f32.vlgmr.msra.gmra.mrb[8].mxu1 %vm258_vm14, %v674_v55 }
 0x7ed   :  { %v747_v58 = vpop.f32.mrb[8].mxu1 }
 0x7ee   :  { %v748_v59 = vadd.f32 %v747_v58, %v48_v57  ;;  %v877_v60 = vpop.f32.mrb[9].mxu1 }
 0x7f0   :  { %751 = vst [vmem:[%s1093_s2] sm:$0xff] %v748_v59 }
 0x7f1   :  { %756 = vsyncpa [#allocation3], 1 }

</bundles_post_ra>
